<compile_context>
chip_gen: v6e
topology: v6e:2x2x1
jax: 0.10.0
libtpu: 0.0.40
codegen_flags: <defaults>
</compile_context>

<pallas_src>
import functools

import jax
import jax.numpy as jnp
from jax.experimental import pallas as pl
from jax.experimental.pallas import tpu as pltpu


# ---------------------------------------------------------------------------
# In-kernel helpers
# ---------------------------------------------------------------------------
def _pair_partner(x):
    """For every lane, the other member of its (class-0, class-1) pair.

    Even lane i pairs with lane i+1, odd lane i pairs with lane i-1.  The
    circular wrap of `roll` is never selected (parity always picks the
    non-wrapping direction).
    """
    cols = x.shape[-1]
    axis = x.ndim - 1
    right = pltpu.roll(x, shift=cols - 1, axis=axis)  # result[i] = x[i+1]
    left = pltpu.roll(x, shift=1, axis=axis)          # result[i] = x[i-1]
    lane = jax.lax.broadcasted_iota(jnp.int32, x.shape, axis)
    is_even = (lane & 1) == 0
    return jnp.where(is_even, right, left), is_even


# ---------------------------------------------------------------------------
# Kernels
# ---------------------------------------------------------------------------
def _log_softmax_pair_kernel(x_ref, o_ref):
    """training=True path: log_softmax over the size-2 class axis (interleaved)."""
    x = x_ref[...].astype(jnp.float32)
    partner, _ = _pair_partner(x)
    m = jnp.maximum(x, partner)
    d = jnp.minimum(x, partner) - m                 # <= 0
    # logsumexp over the pair with a single exp + single log (vs 2 exp + log).
    lse = m + jnp.log(1.0 + jnp.exp(d))
    o_ref[...] = (x - lse).astype(o_ref.dtype)


def _softmax_pair_eval_kernel(x_ref, p_ref, lbl_ref, *, ord_num):
    """training=False path: pair softmax probs (interleaved) + ordinal label."""
    x = x_ref[...].astype(jnp.float32)
    partner, is_even = _pair_partner(x)
    # softmax prob of each class = sigmoid(x - partner); stays interleaved,
    # so the stored plane is lane-dense.
    p = 1.0 / (1.0 + jnp.exp(partner - x))
    p_ref[...] = p.astype(p_ref.dtype)
    # Ordinal label: (p0 > 0.5) <=> (x0 > x1)  -- pure VPU compare, no
    # transcendental in the label path.  Sum over contiguous lane slices per
    # group (avoids a (rows, 4, ord_num) lane relayout).
    win = jnp.where(jnp.logical_and(is_even, x > partner), 1, 0).astype(jnp.int32)
    span = 2 * ord_num
    cnts = [
        jnp.sum(win[:, g * span:(g + 1) * span], axis=-1, keepdims=True)
        for g in range(4)
    ]
    cnt = jnp.concatenate(cnts, axis=-1)            # (tile_rows, 4)
    lbl_ref[...] = jnp.clip(cnt - 1, 0, ord_num - 1).astype(lbl_ref.dtype)


# ---------------------------------------------------------------------------
# Tiling / pallas_call wrappers
# ---------------------------------------------------------------------------
def _choose_row_tile(rows, lane_cols, n_planes, vmem_budget_bytes=8 << 20):
    """Largest row tile that fits a conservative VMEM budget (safe on v7x's
    64 MiB VMEM as well), a multiple of 8 sublanes, capped so the grid keeps
    >= 2 steps where possible (v7x megacore sharding / pipeline overlap)."""
    per_row_bytes = n_planes * 2 * lane_cols * 4    # f32 planes, double-buffered
    tr = vmem_budget_bytes // max(per_row_bytes, 1)
    tr = min(tr, 2048)
    tr = min(tr, max(8, pl.cdiv(rows, 2)))
    tr = max(8, (tr // 8) * 8)
    return tr


def _train_call(x2d):
    rows, cols = x2d.shape
    tr = _choose_row_tile(rows, cols, n_planes=2)
    grid = (pl.cdiv(rows, tr),)
    spec = pl.BlockSpec((tr, cols), lambda i: (i, 0))
    nbytes = 2 * rows * cols * jnp.dtype(x2d.dtype).itemsize
    return pl.pallas_call(
        _log_softmax_pair_kernel,
        out_shape=jax.ShapeDtypeStruct((rows, cols), x2d.dtype),
        grid_spec=pltpu.PrefetchScalarGridSpec(
            num_scalar_prefetch=0,
            grid=grid,
            in_specs=[spec],
            out_specs=spec,
        ),
        compiler_params=pltpu.CompilerParams(
            dimension_semantics=("parallel",)
        ),
        cost_estimate=pl.CostEstimate(
            flops=8 * rows * cols,
            transcendentals=2 * rows * cols,
            bytes_accessed=nbytes,
        ),
    )(x2d)


def _eval_call(x2d, ord_num):
    rows, cols = x2d.shape
    tr = _choose_row_tile(rows, cols, n_planes=2)
    grid = (pl.cdiv(rows, tr),)
    spec = pl.BlockSpec((tr, cols), lambda i: (i, 0))
    lbl_spec = pl.BlockSpec((tr, 4), lambda i: (i, 0))
    nbytes = 2 * rows * cols * jnp.dtype(x2d.dtype).itemsize + rows * 4 * 4
    return pl.pallas_call(
        functools.partial(_softmax_pair_eval_kernel, ord_num=ord_num),
        out_shape=(
            jax.ShapeDtypeStruct((rows, cols), x2d.dtype),
            jax.ShapeDtypeStruct((rows, 4), jnp.int32),
        ),
        grid_spec=pltpu.PrefetchScalarGridSpec(
            num_scalar_prefetch=0,
            grid=grid,
            in_specs=[spec],
            out_specs=[spec, lbl_spec],
        ),
        compiler_params=pltpu.CompilerParams(
            dimension_semantics=("parallel",)
        ),
        cost_estimate=pl.CostEstimate(
            flops=10 * rows * cols,
            transcendentals=rows * cols,
            bytes_accessed=nbytes,
        ),
    )(x2d)


def ordinal_regression_forward(x, ord_num, training=True):
    """Pallas equivalent of OrdinalRegressionLayer.forward.

    x: (N, seq_len, 4*ord_num*2) float array.
    training=True  -> log-prob tensor (N, seq_len, 4, ord_num, 2)
    training=False -> (ord_prob (N, seq_len, 4, ord_num), ord_label int32 (N, seq_len, 4))
    """
    N, seq_len, priv_dim = x.shape
    assert priv_dim == 4 * ord_num * 2, (
        "Mismatch between priv_dim and expected dimensions"
    )
    rows = N * seq_len
    # Contiguous (free) reshape to a 2-D lane-dense plane; no de-interleave.
    x2d = x.reshape(rows, priv_dim)

    if training:
        out = _train_call(x2d)                      # interleaved log-probs
        return out.reshape(N, seq_len, 4, ord_num, 2)
    else:
        p, lbl = _eval_call(x2d, ord_num)
        # Class-0 extraction is a lane de-interleave (compaction); done as a
        # single cheap XLA slice here rather than a lane shuffle in-kernel.
        ord_prob = p.reshape(N, seq_len, 4, ord_num, 2)[..., 0]
        ord_label = lbl.reshape(N, seq_len, 4)
        return ord_prob, ord_label


# ---------------------------------------------------------------------------
# Main
# ---------------------------------------------------------------------------
if __name__ == "__main__":
    N, seq_len, ord_num = 2, 8, 16
    priv_dim = 4 * ord_num * 2  # 128

    key = jax.random.PRNGKey(0)
    x = jax.random.normal(key, (N, seq_len, priv_dim), dtype=jnp.float32)

    # training=True path
    log_prob = ordinal_regression_forward(x, ord_num, training=True)
    log_prob = jax.block_until_ready(log_prob)

    # training=False path
    ord_prob, ord_label = ordinal_regression_forward(x, ord_num, training=False)
    ord_prob = jax.block_until_ready(ord_prob)
    ord_label = jax.block_until_ready(ord_label)

    # pure-JAX reference check
    x5 = x.reshape(N, seq_len, 4, ord_num, 2)
    ref_log_prob = jax.nn.log_softmax(x5, axis=-1)
    ref_prob = jax.nn.softmax(x5, axis=-1)[..., 0]
    ref_label = jnp.clip(
        jnp.sum((ref_prob > 0.5).astype(jnp.int32), axis=-1) - 1,
        0,
        ord_num - 1,
    )

    assert log_prob.shape == (N, seq_len, 4, ord_num, 2)
    assert ord_prob.shape == (N, seq_len, 4, ord_num)
    assert ord_label.shape == (N, seq_len, 4)
    assert jnp.allclose(log_prob, ref_log_prob, atol=1e-5, rtol=1e-5)
    assert jnp.allclose(ord_prob, ref_prob, atol=1e-5, rtol=1e-5)
    assert jnp.array_equal(ord_label, ref_label)

    print("KERNEL_OK")
</pallas_src>

<mosaic_0001>
module attributes {stable_mosaic.version = 11 : i64} {
  func.func @_log_softmax_pair_kernel(%arg0: i32, %arg1: memref<8x128xf32, #tpu.memory_space<vmem>>, %arg2: memref<8x128xf32, #tpu.memory_space<vmem>>) attributes {dimension_semantics = [#tpu.dimension_semantics<parallel>], iteration_bounds = array<i64: 2>, scalar_prefetch = 0 : i64, scratch_operands = 0 : i64, tpu.core_type = #tpu.core_type<tc>, window_params = [{transform_indices = @transform_0, window_bounds = array<i64: 8, 128>}, {transform_indices = @transform_1, window_bounds = array<i64: 8, 128>}]} {
    %c0 = arith.constant 0 : index
    %c0_0 = arith.constant 0 : index
    %0 = vector.load %arg1[%c0, %c0_0] : memref<8x128xf32, #tpu.memory_space<vmem>>, vector<8x128xf32>
    %c127_i32 = arith.constant 127 : i32
    %1 = tpu.dynamic_rotate %0 by %c127_i32 dim 1 : vector<8x128xf32>, i32 -> vector<8x128xf32>
    %c1_i32 = arith.constant 1 : i32
    %2 = tpu.dynamic_rotate %0 by %c1_i32 dim 1 : vector<8x128xf32>, i32 -> vector<8x128xf32>
    %3 = tpu.iota {dimensions = array<i32: 1>} : vector<8x128xi32>
    %c1_i32_1 = arith.constant 1 : i32
    %4 = vector.broadcast %c1_i32_1 : i32 to vector<8x128xi32>
    %5 = arith.andi %3, %4 : vector<8x128xi32>
    %c0_i32 = arith.constant 0 : i32
    %6 = vector.broadcast %c0_i32 : i32 to vector<8x128xi32>
    %7 = arith.cmpi eq, %5, %6 : vector<8x128xi32>
    %8 = arith.select %7, %1, %2 : vector<8x128xi1>, vector<8x128xf32>
    %9 = arith.maximumf %0, %8 : vector<8x128xf32>
    %10 = arith.minimumf %0, %8 : vector<8x128xf32>
    %11 = arith.subf %10, %9 : vector<8x128xf32>
    %12 = math.exp %11 : vector<8x128xf32>
    %cst = arith.constant 1.000000e+00 : f32
    %13 = vector.broadcast %cst : f32 to vector<8x128xf32>
    %14 = arith.addf %13, %12 : vector<8x128xf32>
    %15 = math.log %14 : vector<8x128xf32>
    %16 = arith.addf %9, %15 : vector<8x128xf32>
    %17 = arith.subf %0, %16 : vector<8x128xf32>
    %c0_2 = arith.constant 0 : index
    %c0_3 = arith.constant 0 : index
    %18 = vector.load %arg2[%c0_2, %c0_3] : memref<8x128xf32, #tpu.memory_space<vmem>>, vector<8x128xf32>
    tpu.vector_store %arg2[%c0_2, %c0_3], %17 {strides = array<i32>} : memref<8x128xf32, #tpu.memory_space<vmem>>, vector<8x128xf32>,
    return
  }
  func.func @transform_0(%arg0: i32) -> (i32, i32) {
    %c0_i32 = arith.constant 0 : i32
    %c0_i32_0 = arith.constant 0 : i32
    return %arg0, %c0_i32 : i32, i32
  }
  func.func @transform_1(%arg0: i32) -> (i32, i32) {
    %c0_i32 = arith.constant 0 : i32
    %c0_i32_0 = arith.constant 0 : i32
    return %arg0, %c0_i32 : i32, i32
  }
}

</mosaic_0001>

<bundles_post_ra>
// kernel: tpu_custom_call.1
= control target key start
LH: loop header
LB: loop body
LE: loop exit
PB: predicated region body
PF: predicated region fallthrough
CT: control target
= control target key end

     0   :  { %6 = vsyncpa [#allocation3], 0  ;;  %s550_s0 = inlined_call_operand.hbm [shape: f32[16,128], index: 0, kind: input, shape index: {}]   ;;  %s551_s1 = inlined_call_operand.hbm [shape: f32[16,128], index: 1, kind: output, shape index: {}]  }
   0x1   :  { %8 = vsyncpa [#allocation3 + $0x1], 0 }
   0x2   :  { %9 = vsyncpa [#allocation4], 0 }
   0x3   :  { %11 = vsyncpa [#allocation4 + $0x1], 0  ;;  %s409_s6 = smov 0   ;;  %s411_s7 = smov 0  }
   0x4   :  { %s413_s8 = smov 0   ;;  %s415_s9 = smov 0  }
   0x5 LB: > { %s430_s10 = sadd.s32 4294967295, %s393_s9   ;;  %s237_s11 = sadd.s32 4294967294, %s393_s9   ;;  %s393_s9 = sphi %s415_s9, %s568_s9   ;;  %s389_s8 = sphi %s413_s8, %s567_s8   ;;  %s385_s7 = sphi %s411_s7, %s566_s7   ;;  %s381_s6 = sphi %s409_s6, %s565_s6  }
   0x6   : > { %s434_s12 = sadd.s32 1, %s393_s9   ;;  %s24_s13 = sadd.s32 1, %s389_s8 }
   0x7   : > { %s21_s14 = ssub.s32 %s393_s9, %s434_s12  ;;  %p31_p0 = scmp.ne.s32.totalorder %s389_s8, %s385_s7 }
   0x8   : > { %p22_p1 = scmp.eq.s32.totalorder %s21_s14, 0  ;;  %p32_p2 = scmp.eq.s32.totalorder %s393_s9, 0 }
   0x9   : > { %p37_p3 = scmp.ne.s32.totalorder %s385_s7, %s381_s6  ;;  %p38_p4 = scmp.eq.s32.totalorder %s430_s10, 0 }
   0xa   : > { %s446_s15 = scalar_select %p22_p1, %s389_s8, %s24_s13  }
   0xb   : > { %p448_p5 = por %p32_p2, %p31_p0  ;;  %p452_p6 = por %p38_p4, %p37_p3 }
   0xc   : > { %p61_p7 = scmp.eq.s32.totalorder %s430_s10, 1  ;;  %p67_p8 = scmp.eq.s32.totalorder %s237_s11, 1 }
   0xd   : > { %s555_s17 = scalar_select %p452_p6, 1, 0 }
   0xe   : > { %p261_p10 = scmp.lt.s32.totalorder %s393_s9, 2  ;;  %p459_p11 = por %p61_p7, %p31_p0 }
   0xf   : > { %p463_p12 = por %p67_p8, %p37_p3  ;;  %s87_s20 = sand.u32 1, %s389_s8  }
  0x10   : > { %s556_s18 = scalar_select %p459_p11, 1, 0 }
  0x11   : > { %s557_s19 = scalar_select %p463_p12, 1, 0 }
  0x12   : > { %s241_s21 = sshll.u32 %s393_s9, 7  ;;  %s240_s22 = sshll.u32 %s87_s20, 3 }
  0x13   : > { %s472_s25 = scalar_lea.hbm %s550_s0, %s241_s21  ;;  %s91_s26 = scalar_lea.vmem [#allocation2], %s240_s22 }
  0x14   : > { %s98_s27 = sshll.u32 %s91_s26, 4  ;;  %p476_p13 = pnand %p261_p10, %p448_p5  ;;  %s480_s27 = int_to_ptr.vmem [resolvable:$true] %s98_s27 }
  0x15   : > { %s88_s29 = scalar_lea.sflag [#allocation3], %s87_s20  ;;  %s301_s30 = scalar_lea.hbm %s472_s25, 128 }
  0x16   : > { %p302_p2 = scmp.ne.s32.totalorder %s472_s25, %s301_s30  ;;  %p303_p3 = pneg %p476_p13 }
  0x17   : > { %s306_s4 = scalar_lea.hbm %s550_s0, 256  ;;  %p307_p5 = scmp.lt.s32.totalorder %s472_s25, %s550_s0 }
  0x18   : > { %p304_p4 = pnand %p303_p3, %p302_p2  ;;  %p308_p8 = scmp.lt.s32.totalorder %s306_s4, %s301_s30 }
  0x1a   : > { %p305_p7 = pneg %p304_p4  ;;  %p309_p10 = por %p308_p8, %p307_p5 }
  0x1c   : > { %p310_p9 = pnand %p309_p10, %p305_p7 }
  0x1e   : > { %313 = shalt.err (!%p310_p9)
}
  0x1f   : > { %s314_s13 = scalar_lea.vmem %s480_s27, 128  ;;  %s395_s14 = smov [#allocation2]  }
  0x20   : > { %p315_p0 = scmp.ne.s32.totalorder %s480_s27, %s314_s13  ;;  %s319_s16 = sshll.u32 %s395_s14, 4  ;;  %s320_s16 = int_to_ptr.vmem [resolvable:$false] %s319_s16 }
  0x21   : > { %s321_s20 = scalar_lea.vmem %s320_s16, 256  ;;  %p322_p4 = scmp.lt.s32.totalorder %s480_s27, %s320_s16 }
  0x22   : > { %p317_p1 = pnand %p315_p0, %p303_p3  ;;  %p323_p12 = scmp.lt.s32.totalorder %s321_s20, %s314_s13 }
  0x24   : > { %p318_p2 = pneg %p317_p1  ;;  %p324_p11 = por %p323_p12, %p322_p4 }
  0x26   : > { %p325_p6 = pnand %p324_p11, %p318_p2 }
  0x28   : > { %328 = shalt.err (!%p325_p6)
}
  0x29   : > { %256 = dma.hbm_to_vmem [thread:$0]  (!%p476_p13), %s472_s25, 128, %s480_s27, %s88_s29  }
  0x2a   : > { %p559_p9 = scmp.lt.s32.totalorder %s393_s9, 3  ;;  %p560_p7 = scmp.ge.s32.totalorder %s393_s9, 1 }
  0x2c   : > { %p104_p0 = pnand %p560_p7, %p559_p9 }
  0x2d   : > { %s507_s21 = sand.u32 (!%p104_p0), 1, %s385_s7   ;;  %p561_p6 = scmp.ne.s32.totalorder (!%p104_p0), %s555_s17, 0 }
  0x2e   : > { %107 = sbr.rel (%p104_p0) target bundleno = 228 (0xe4), region = 24  ;;  %s243_s22 = sshll.u32 (!%p104_p0), %s507_s21, 3 }
  0x2f   : > { %s110_s23 = scalar_lea.sflag (!%p104_p0), [#allocation3], %s507_s21  ;;  %s113_s24 = scalar_lea.vmem (!%p104_p0), [#allocation2], %s243_s22 }
  0x33   : > { %372 = dma.done.wait (%p561_p6), %s110_s23, 128  }
  0x34   : > { %374 = vsyncadd (%p561_p6), %s110_s23, 4294967168  ;;  %v132_v0 = vld [vmem:[%s113_s24] sm:$0xff]  ;;  %s396_s25 = smov 127   ;;  %s397_s26 = smov 1   ;;  %v137_v1 = vlaneseq }
  0x35   : > { %133 = vrot.lane.b32.xlu0 %v132_v0, %s396_s25  ;;  %s246_s17 = sshll.u32 %s430_s10, 7  ;;  %s131_s27 = scalar_lea.vmem [#allocation5], %s243_s22 }
  0x36   : > { %v138_v2 = vand.u32 127, %v137_v1  ;;  %s167_s28 = sshll.u32 %s131_s27, 4  ;;  %s165_s2 = scalar_lea.hbm %s551_s1, %s246_s17  ;;  %s168_s28 = int_to_ptr.vmem [resolvable:$true] %s167_s28 }
  0x37   : > { %s154_s3 = scalar_lea.sflag [#allocation4], %s507_s21  ;;  %s329_s4 = scalar_lea.vmem %s168_s28, 128 }
  0x38   : > { %v139_v3 = vand.u32 1, %v138_v2  ;;  %p330_p11 = scmp.ne.s32.totalorder %s168_s28, %s329_s4  ;;  %p562_p12 = scmp.ne.s32.totalorder %s556_s18, 0 }
  0x39   : > { %135 = vrot.lane.b32.xlu0 %v132_v0, %s397_s26  ;;  %s398_s5 = smov [#allocation5]  }
  0x3a   : > { %vm140_vm0 = vcmp.eq.s32.totalorder %v139_v3, 0  ;;  %p331_p13 = pnand %p330_p11, %p562_p12  ;;  %s333_s11 = sshll.u32 %s398_s5, 4  ;;  %s334_s11 = int_to_ptr.vmem [resolvable:$false] %s333_s11 }
  0x3b   : > { %s335_s10 = scalar_lea.vmem %s334_s11, 256  ;;  %p336_p3 = scmp.lt.s32.totalorder %s168_s28, %s334_s11 }
  0x3c   : > { %p332_p1 = pneg %p331_p13  ;;  %p337_p5 = scmp.lt.s32.totalorder %s335_s10, %s329_s4 }
  0x3e   : > { %p338_p8 = por %p337_p5, %p336_p3 }
  0x40   : > { %p339_p10 = pnand %p338_p8, %p332_p1 }
  0xa7   : > { %v134_v4 = vpop.permute.xlu0 %133 }
  0xab   : > { %v136_v5 = vpop.permute.xlu0 %135 }
  0xac   : > { %v141_v6 = vsel %vm140_vm0, %v134_v4, %v136_v5 }
  0xad   : > { %v142_v7 = vmax.f32 %v132_v0, %v141_v6  ;;  %v143_v8 = vmin.f32 %v132_v0, %v141_v6 }
  0xaf   : > { %v144_v9 = vsub.f32 %v143_v8, %v142_v7 }
  0xb1   : > { %v145_v10 = vmul.f32 1.442695, %v144_v9 }
  0xb3   : > { %297 = vpow2.f32 %v145_v10 }
  0xc0   : > { %v298_v11 = vpop.eup %297 }
  0xc1   : > { %v147_v12 = vadd.f32 1.0, %v298_v11 }
  0xc3   : > { %299 = vlog2.f32 %v147_v12 }
  0xd0   : > { %v300_v13 = vpop.eup %299 }
  0xd1   : > { %v149_v14 = vmul.f32 0.6931472, %v300_v13 }
  0xd3   : > { %v150_v15 = vadd.f32 %v149_v14, %v142_v7 }
  0xd5   : > { %v151_v16 = vsub.f32 %v132_v0, %v150_v15 }
  0xd7   : > { %152 = vst [vmem:[%s131_s27] sm:$0xff] %v151_v16 }
  0xd8   : > { %342 = shalt.err (!%p339_p10)
}
  0xd9   : > { %s343_s13 = scalar_lea.hbm %s165_s2, 128  ;;  %s347_s20 = scalar_lea.hbm %s551_s1, 256 }
  0xda   : > { %p344_p2 = scmp.ne.s32.totalorder %s165_s2, %s343_s13  ;;  %p348_p7 = scmp.lt.s32.totalorder %s165_s2, %s551_s1 }
  0xdb   : > { %p349_p0 = scmp.lt.s32.totalorder %s347_s20, %s343_s13 }
  0xdc   : > { %p345_p4 = pnand %p344_p2, %p562_p12 }
  0xdd   : > { %p350_p6 = por %p349_p0, %p348_p7 }
  0xde   : > { %p346_p9 = pneg %p345_p4 }
  0xe0   : > { %p351_p11 = pnand %p350_p6, %p346_p9 }
  0xe2   : > { %354 = shalt.err (!%p351_p11)
}
  0xe3   : > { %251 = dma.vmem_to_hbm [thread:$0]  (%p562_p12), %s168_s28, 128, %s165_s2, %s154_s3  }
  0xe4 PF: > { %s179_s23 = sand.u32 1, %s381_s6   ;;  %p563_p13 = scmp.ne.s32.totalorder %s557_s19, 0 }
  0xe5   : > { %p564_p1 = scmp.ge.s32.totalorder %s393_s9, 2  ;;  %s180_s24 = scalar_lea.sflag [#allocation4], %s179_s23 }
  0xe7   : > { %p258_p3 = pnand %p564_p1, %p563_p13 }
  0xe9   : > { %p259_p5 = pneg %p258_p3 }
  0xeb   : > { %376 = dma.done.wait (%p259_p5), %s180_s24, 128  }
  0xec   : > { %378 = vsyncadd (%p259_p5), %s180_s24, 4294967168  ;;  %p14_p8 = scmp.ge.s32.totalorder %s434_s12, 4   ;;  %s565_s6 = smov %s385_s7 }
  0xed   : > { %s566_s7 = smov %s389_s8  ;;  %s567_s8 = smov %s446_s15 }
  0xee   : > { %s568_s9 = smov %s434_s12  ;;  %16 = sbr.rel (!%p14_p8) target bundleno = 5 (0x5), region = 69 }
  0xf3   :  { %185 = vsyncpa [#allocation3], 1 }
  0xf4   :  { %187 = vsyncpa [#allocation3 + $0x1], 1 }
  0xf5   :  { %188 = vsyncpa [#allocation4], 1 }
  0xf6   :  { %190 = vsyncpa [#allocation4 + $0x1], 1 }

</bundles_post_ra>
